<compile_context>
chip_gen: v7x
topology: tpu7x:2x2x1
jax: 0.10.0
libtpu: 0.0.40
codegen_flags: <defaults>
</compile_context>

<pallas_src>
import jax
import jax.numpy as jnp
from jax.experimental import pallas as pl
from jax.experimental.pallas import tpu as pltpu


LAYER_LIST = [4, 32, 64, 32, 2]   # banknote: 4 features -> 2 classes

PAD = 128          # lane width for hidden activations / padded weight columns
MAX_TILE_B = 512   # cap on batch rows per grid step


def _fused_mlp_kernel(x_ref, w1_ref, wh_ref, b_ref, o_ref):
    """Fused MLP; one grid step = one batch tile, all layers in-register.

    x_ref : [tile_b, din]         bf16  (true feature width, unpadded)
    w1_ref: [din, PAD]            bf16  (cols beyond real out_dim are zero)
    wh_ref: [n_hidden, PAD, PAD]  bf16  (zero outside each real in x out block)
    b_ref : [n_layers, PAD]       f32   (zero beyond real out_dim)
    o_ref : [tile_b, PAD]         f32
    """
    # Layer 1: bf16 MXU matmul, f32 accumulate; bias + ReLU in f32.
    h = jnp.dot(x_ref[...], w1_ref[...], preferred_element_type=jnp.float32)
    h = jnp.maximum(h + b_ref[0:1, :], 0.0)
    # Remaining layers (weights resident in VMEM across all grid steps).
    for li in range(wh_ref.shape[0]):
        y = jnp.dot(h.astype(jnp.bfloat16), wh_ref[li],
                    preferred_element_type=jnp.float32)
        h = jnp.maximum(y + b_ref[li + 1:li + 2, :], 0.0)
    o_ref[...] = h.astype(o_ref.dtype)


def init_params(key, layer_list):
    """Params mimicking PyTorch nn.Linear default init (uniform +-1/sqrt(in)).
    Weights stored as [in_dim, out_dim] (transpose of PyTorch's [out, in])."""
    params = []
    for in_dim, out_dim in zip(layer_list[:-1], layer_list[1:]):
        key, kw, kb = jax.random.split(key, 3)
        bound = 1.0 / jnp.sqrt(in_dim)
        w = jax.random.uniform(kw, (in_dim, out_dim), jnp.float32, -bound, bound)
        b = jax.random.uniform(kb, (1, out_dim), jnp.float32, -bound, bound)
        params.append((w, b))
    return params


def _round_up(v, m):
    return ((v + m - 1) // m) * m


def _choose_tile_b(batch):
    # >= 2 grid steps so both v7x TensorCores get work; big tiles otherwise
    # (per-step overhead dominates); multiple of 16 for bf16 sublane packing.
    tile = min(MAX_TILE_B, pl.cdiv(batch, 2))
    return max(16, _round_up(tile, 16))


def pack_params(params):
    """Pad/pack per-layer (w [in,out], b [1,out]) params for the kernel.

    Returns (w1 [din, PAD] bf16, wh [n-1, PAD, PAD] bf16, bias [n, PAD] f32).
    """
    n = len(params)
    din0, dout0 = params[0][0].shape
    w1 = jnp.zeros((din0, PAD), jnp.bfloat16).at[:, :dout0].set(
        params[0][0].astype(jnp.bfloat16))
    wh = jnp.zeros((n - 1, PAD, PAD), jnp.bfloat16)
    bias = jnp.zeros((n, PAD), jnp.float32)
    bias = bias.at[0, :dout0].set(params[0][1].reshape(-1).astype(jnp.float32))
    for li, (w, b) in enumerate(params[1:]):
        di, do = w.shape
        wh = wh.at[li, :di, :do].set(w.astype(jnp.bfloat16))
        bias = bias.at[li + 1, :do].set(b.reshape(-1).astype(jnp.float32))
    return w1, wh, bias


def banknote_forward(x, params):
    """x: [B, layer_list[0]] -> [B, layer_list[-1]] (ReLU'd outputs)."""
    B, din = x.shape
    dout = params[-1][0].shape[1]
    n_layers = len(params)
    n_hidden = n_layers - 1

    w1, wh, bias = pack_params(params)
    xb = x.astype(jnp.bfloat16)          # stream activations in bf16

    tile_b = _choose_tile_b(B)
    grid = (pl.cdiv(B, tile_b),)         # partial last block handled by masking

    dims = [din] + [w.shape[1] for w, _ in params]
    flops = 2 * B * sum(a * b for a, b in zip(dims[:-1], dims[1:]))
    bytes_accessed = (
        B * din * 2                       # bf16 input
        + B * dout * 4                    # useful f32 output
        + sum(w.size * 2 + b.size * 4 for w, b in params))

    out = pl.pallas_call(
        _fused_mlp_kernel,
        out_shape=jax.ShapeDtypeStruct((B, PAD), jnp.float32),
        grid_spec=pl.GridSpec(
            grid=grid,
            in_specs=[
                pl.BlockSpec((tile_b, din), lambda i: (i, 0)),            # streamed
                pl.BlockSpec((din, PAD), lambda i: (0, 0)),               # resident
                pl.BlockSpec((n_hidden, PAD, PAD), lambda i: (0, 0, 0)),  # resident
                pl.BlockSpec((n_layers, PAD), lambda i: (0, 0)),          # resident
            ],
            out_specs=pl.BlockSpec((tile_b, PAD), lambda i: (i, 0)),
        ),
        compiler_params=pltpu.CompilerParams(
            dimension_semantics=("parallel",)),
        cost_estimate=pl.CostEstimate(
            flops=flops, transcendentals=0, bytes_accessed=bytes_accessed),
    )(xb, w1, wh, bias)

    return out[:, :dout]


def banknote_forward_ref(x, params):
    # Pure-JAX reference for correctness checking.
    for w, b in params:
        x = jnp.maximum(x @ w + b, 0.0)
    return x


if __name__ == "__main__":
    key = jax.random.PRNGKey(0)
    key, kx = jax.random.split(key)

    # Not a multiple of tile_b -> exercises the partial-last-block path.
    batch = 200
    x = jax.random.normal(kx, (batch, LAYER_LIST[0]), jnp.float32)
    params = init_params(key, LAYER_LIST)

    # Quantize weights to bf16 once so kernel and reference use identical weight
    # values; the remaining delta vs the reference is only the in-kernel bf16
    # rounding of activations between layers.
    params_bf = [(w.astype(jnp.bfloat16), b) for w, b in params]

    out = banknote_forward(x, params_bf)
    out = jax.block_until_ready(out)

    ref_params = [(w.astype(jnp.float32), b) for w, b in params_bf]
    ref = banknote_forward_ref(x.astype(jnp.bfloat16).astype(jnp.float32), ref_params)

    assert out.shape == (batch, LAYER_LIST[-1])
    assert jnp.allclose(out, ref, atol=2e-2, rtol=2e-2), float(jnp.max(jnp.abs(out - ref)))

    print("KERNEL_OK")
</pallas_src>

<mosaic_0001>
module attributes {stable_mosaic.version = 11 : i64} {
  func.func @_fused_mlp_kernel(%arg0: i32, %arg1: memref<112x4xbf16, #tpu.memory_space<vmem>>, %arg2: memref<4x128xbf16, #tpu.memory_space<vmem>>, %arg3: memref<3x128x128xbf16, #tpu.memory_space<vmem>>, %arg4: memref<4x128xf32, #tpu.memory_space<vmem>>, %arg5: memref<112x128xf32, #tpu.memory_space<vmem>>) attributes {dimension_semantics = [#tpu.dimension_semantics<parallel>], iteration_bounds = array<i64: 2>, scalar_prefetch = 0 : i64, scratch_operands = 0 : i64, tpu.core_type = #tpu.core_type<tc>, window_params = [{transform_indices = @transform_0, window_bounds = array<i64: 112, 4>}, {pipeline_mode = #tpu.pipeline_mode<synchronous>, transform_indices = @transform_1, window_bounds = array<i64: 4, 128>}, {pipeline_mode = #tpu.pipeline_mode<synchronous>, transform_indices = @transform_2, window_bounds = array<i64: 3, 128, 128>}, {pipeline_mode = #tpu.pipeline_mode<synchronous>, transform_indices = @transform_3, window_bounds = array<i64: 4, 128>}, {transform_indices = @transform_4, window_bounds = array<i64: 112, 128>}]} {
    %c0 = arith.constant 0 : index
    %c0_0 = arith.constant 0 : index
    %0 = vector.load %arg1[%c0, %c0_0] : memref<112x4xbf16, #tpu.memory_space<vmem>>, vector<112x4xbf16>
    %c0_1 = arith.constant 0 : index
    %c0_2 = arith.constant 0 : index
    %1 = vector.load %arg2[%c0_1, %c0_2] : memref<4x128xbf16, #tpu.memory_space<vmem>>, vector<4x128xbf16>
    %cst = arith.constant dense<0.000000e+00> : vector<112x128xf32>
    %2 = tpu.matmul %0, %1, %cst {dimension_numbers = #tpu.dot_dimension_numbers<[1], [0], [0], [1], [0, 0, 1, 1], [], []>} : vector<112x4xbf16>, vector<4x128xbf16>, vector<112x128xf32> -> vector<112x128xf32>
    %c0_3 = arith.constant 0 : index
    %c0_4 = arith.constant 0 : index
    %3 = vector.load %arg4[%c0_3, %c0_4] : memref<4x128xf32, #tpu.memory_space<vmem>>, vector<1x128xf32>
    %4 = vector.broadcast %3 : vector<1x128xf32> to vector<112x128xf32>
    %5 = arith.addf %2, %4 : vector<112x128xf32>
    %cst_5 = arith.constant 0.000000e+00 : f32
    %6 = vector.broadcast %cst_5 : f32 to vector<112x128xf32>
    %7 = arith.maximumf %5, %6 : vector<112x128xf32>
    %8 = arith.truncf %7 : vector<112x128xf32> to vector<112x128xbf16>
    %c0_6 = arith.constant 0 : index
    %c0_7 = arith.constant 0 : index
    %c0_8 = arith.constant 0 : index
    %9 = vector.load %arg3[%c0_6, %c0_7, %c0_8] : memref<3x128x128xbf16, #tpu.memory_space<vmem>>, vector<1x128x128xbf16>
    %10 = vector.shape_cast %9 : vector<1x128x128xbf16> to vector<128x128xbf16>
    %cst_9 = arith.constant dense<0.000000e+00> : vector<112x128xf32>
    %11 = tpu.matmul %8, %10, %cst_9 {dimension_numbers = #tpu.dot_dimension_numbers<[1], [0], [0], [1], [0, 0, 1, 1], [], []>} : vector<112x128xbf16>, vector<128x128xbf16>, vector<112x128xf32> -> vector<112x128xf32>
    %c1 = arith.constant 1 : index
    %c0_10 = arith.constant 0 : index
    %12 = vector.load %arg4[%c1, %c0_10] : memref<4x128xf32, #tpu.memory_space<vmem>>, vector<1x128xf32>
    %13 = vector.broadcast %12 : vector<1x128xf32> to vector<112x128xf32>
    %14 = arith.addf %11, %13 : vector<112x128xf32>
    %cst_11 = arith.constant 0.000000e+00 : f32
    %15 = vector.broadcast %cst_11 : f32 to vector<112x128xf32>
    %16 = arith.maximumf %14, %15 : vector<112x128xf32>
    %17 = arith.truncf %16 : vector<112x128xf32> to vector<112x128xbf16>
    %c1_12 = arith.constant 1 : index
    %c0_13 = arith.constant 0 : index
    %c0_14 = arith.constant 0 : index
    %18 = vector.load %arg3[%c1_12, %c0_13, %c0_14] : memref<3x128x128xbf16, #tpu.memory_space<vmem>>, vector<1x128x128xbf16>
    %19 = vector.shape_cast %18 : vector<1x128x128xbf16> to vector<128x128xbf16>
    %cst_15 = arith.constant dense<0.000000e+00> : vector<112x128xf32>
    %20 = tpu.matmul %17, %19, %cst_15 {dimension_numbers = #tpu.dot_dimension_numbers<[1], [0], [0], [1], [0, 0, 1, 1], [], []>} : vector<112x128xbf16>, vector<128x128xbf16>, vector<112x128xf32> -> vector<112x128xf32>
    %c2 = arith.constant 2 : index
    %c0_16 = arith.constant 0 : index
    %21 = vector.load %arg4[%c2, %c0_16] : memref<4x128xf32, #tpu.memory_space<vmem>>, vector<1x128xf32>
    %22 = vector.broadcast %21 : vector<1x128xf32> to vector<112x128xf32>
    %23 = arith.addf %20, %22 : vector<112x128xf32>
    %cst_17 = arith.constant 0.000000e+00 : f32
    %24 = vector.broadcast %cst_17 : f32 to vector<112x128xf32>
    %25 = arith.maximumf %23, %24 : vector<112x128xf32>
    %26 = arith.truncf %25 : vector<112x128xf32> to vector<112x128xbf16>
    %c2_18 = arith.constant 2 : index
    %c0_19 = arith.constant 0 : index
    %c0_20 = arith.constant 0 : index
    %27 = vector.load %arg3[%c2_18, %c0_19, %c0_20] : memref<3x128x128xbf16, #tpu.memory_space<vmem>>, vector<1x128x128xbf16>
    %28 = vector.shape_cast %27 : vector<1x128x128xbf16> to vector<128x128xbf16>
    %cst_21 = arith.constant dense<0.000000e+00> : vector<112x128xf32>
    %29 = tpu.matmul %26, %28, %cst_21 {dimension_numbers = #tpu.dot_dimension_numbers<[1], [0], [0], [1], [0, 0, 1, 1], [], []>} : vector<112x128xbf16>, vector<128x128xbf16>, vector<112x128xf32> -> vector<112x128xf32>
    %c3 = arith.constant 3 : index
    %c0_22 = arith.constant 0 : index
    %30 = vector.load %arg4[%c3, %c0_22] : memref<4x128xf32, #tpu.memory_space<vmem>>, vector<1x128xf32>
    %31 = vector.broadcast %30 : vector<1x128xf32> to vector<112x128xf32>
    %32 = arith.addf %29, %31 : vector<112x128xf32>
    %cst_23 = arith.constant 0.000000e+00 : f32
    %33 = vector.broadcast %cst_23 : f32 to vector<112x128xf32>
    %34 = arith.maximumf %32, %33 : vector<112x128xf32>
    %c0_24 = arith.constant 0 : index
    %c0_25 = arith.constant 0 : index
    %35 = vector.load %arg5[%c0_24, %c0_25] : memref<112x128xf32, #tpu.memory_space<vmem>>, vector<112x128xf32>
    tpu.vector_store %arg5[%c0_24, %c0_25], %34 {strides = array<i32>} : memref<112x128xf32, #tpu.memory_space<vmem>>, vector<112x128xf32>,
    return
  }
  func.func @transform_0(%arg0: i32) -> (i32, i32) {
    %c0_i32 = arith.constant 0 : i32
    %c0_i32_0 = arith.constant 0 : i32
    return %arg0, %c0_i32 : i32, i32
  }
  func.func @transform_1(%arg0: i32) -> (i32, i32) {
    %c0_i32 = arith.constant 0 : i32
    %c0_i32_0 = arith.constant 0 : i32
    %c0_i32_1 = arith.constant 0 : i32
    return %c0_i32, %c0_i32_0 : i32, i32
  }
  func.func @transform_2(%arg0: i32) -> (i32, i32, i32) {
    %c0_i32 = arith.constant 0 : i32
    %c0_i32_0 = arith.constant 0 : i32
    %c0_i32_1 = arith.constant 0 : i32
    %c0_i32_2 = arith.constant 0 : i32
    return %c0_i32, %c0_i32_0, %c0_i32_1 : i32, i32, i32
  }
  func.func @transform_3(%arg0: i32) -> (i32, i32) {
    %c0_i32 = arith.constant 0 : i32
    %c0_i32_0 = arith.constant 0 : i32
    %c0_i32_1 = arith.constant 0 : i32
    return %c0_i32, %c0_i32_0 : i32, i32
  }
  func.func @transform_4(%arg0: i32) -> (i32, i32) {
    %c0_i32 = arith.constant 0 : i32
    %c0_i32_0 = arith.constant 0 : i32
    return %arg0, %c0_i32 : i32, i32
  }
}

</mosaic_0001>

<bundles_post_ra>
// kernel: tpu_custom_call.1
= control target key start
LH: loop header
LB: loop body
LE: loop exit
PB: predicated region body
PF: predicated region fallthrough
CT: control target
= control target key end

     0   :  { %9 = vsyncpa [#allocation3], 0  ;;  %s1931_s0 = inlined_call_operand.vmem [shape: bf16[200,4], index: 0, kind: input, shape index: {}]   ;;  %s1932_s1 = inlined_call_operand.vmem [shape: bf16[4,128], index: 1, kind: input, shape index: {}]   ;;  %s1933_s2 = inlined_call_operand.hbm [shape: bf16[3,128,128], index: 2, kind: input, shape index: {}]   ;;  %s1934_s3 = inlined_call_operand.vmem [shape: f32[4,128], index: 3, kind: input, shape index: {}]   ;;  %s1935_s4 = inlined_call_operand.hbm [shape: f32[200,128], index: 4, kind: output, shape index: {}]  }
   0x1   :  { %10 = vsyncpa [#allocation4], 0 }
   0x2   :  { %12 = vsyncpa [#allocation4 + $0x1], 0  ;;  %s1574_s15 = smov 0   ;;  %s1576_s16 = smov 0  }
   0x3   :  { %s1578_s17 = smov 0   ;;  %s1580_s18 = smov 0  }
   0x4 LB: > { %s1595_s19 = sadd.s32 4294967295, %s1539_s18   ;;  %s1070_s20 = sadd.s32 4294967294, %s1539_s18   ;;  %s1539_s18 = sphi %s1580_s18, %s1950_s18   ;;  %s1535_s17 = sphi %s1578_s17, %s1949_s17   ;;  %s1531_s16 = sphi %s1576_s16, %s1948_s16   ;;  %s1527_s15 = sphi %s1574_s15, %s1947_s15  }
   0x5   : > { %s1599_s21 = sadd.s32 1, %s1539_s18   ;;  %s114_s22 = sadd.s32 1, %s1535_s17 }
   0x6   : > { %s111_s23 = ssub.s32 %s1539_s18, %s1599_s21  ;;  %p124_p0 = scmp.ne.s32.totalorder %s1535_s17, %s1531_s16 }
   0x7   : > { %p112_p1 = scmp.eq.s32.totalorder %s111_s23, 0  ;;  %p125_p2 = scmp.eq.s32.totalorder %s1595_s19, 1 }
   0x8   : > { %p130_p3 = scmp.ne.s32.totalorder %s1531_s16, %s1527_s15  ;;  %p131_p4 = scmp.eq.s32.totalorder %s1070_s20, 1 }
   0x9   : > { %s1610_s24 = scalar_select %p112_p1, %s1535_s17, %s114_s22  }
   0xa   : > { %p1612_p5 = por %p125_p2, %p124_p0  ;;  %p1616_p6 = por %p131_p4, %p130_p3 }
   0xb   : > { %p1071_p7 = scmp.ge.s32.totalorder %s1539_s18, 1  ;;  %p138_p8 = scmp.lt.s32.totalorder %s1539_s18, 3 }
   0xc   : > { %s1938_s25 = scalar_select %p1612_p5, 1, 0 }
   0xd   : > { %s1939_s26 = scalar_select %p1616_p6, 1, 0 }
   0xe   : > { %p1936_p9 = scmp.eq.s32.totalorder %s1595_s19, 0  ;;  %p1623_p10 = pnand %p1071_p7, %p138_p8 }
   0xf   : > { %s1541_s28 = smov [#allocation2]   ;;  %s1445_s7 = scalar_lea.hbm %s1933_s2, 3072 }
  0x10   : > { %s1940_s27 = scalar_select %p1623_p10, 1, 0 }
  0x11   : > { %s153_s29 = sshll.u32 %s1541_s28, 4  ;;  %p1364_p11 = pneg %p1623_p10  ;;  %s154_s29 = int_to_ptr.vmem [resolvable:$true] %s153_s29 }
  0x12   : > { %p1446_p13 = scmp.ne.s32.totalorder %s1933_s2, %s1445_s7  ;;  %p1452_p3 = scmp.lt.u32.totalorder %s1445_s7, %s1933_s2 }
  0x13   : > { %p1631_p12 = pnand %p1936_p9, %p1364_p11 }
  0x15   : > { %p1447_p0 = pneg %p1631_p12 }
  0x17   : > { %p1448_p1 = pnand %p1447_p0, %p1446_p13 }
  0x19   : > { %p1449_p2 = pneg %p1448_p1 }
  0x1b   : > { %p1454_p4 = pnand %p1452_p3, %p1449_p2 }
  0x1d   : > { %1457 = shalt.err (!%p1454_p4)
}
  0x1e   : > { %s1458_s12 = scalar_lea.vmem %s154_s29, 3072  ;;  %p1466_p9 = scmp.lt.s32.totalorder %s154_s29, %s154_s29 }
  0x1f   : > { %p1459_p7 = scmp.ne.s32.totalorder %s154_s29, %s1458_s12  ;;  %p1467_p6 = scmp.lt.s32.totalorder %s1458_s12, %s1458_s12 }
  0x21   : > { %p1461_p8 = pnand %p1459_p7, %p1447_p0  ;;  %p1468_p5 = por %p1467_p6, %p1466_p9 }
  0x23   : > { %p1462_p11 = pneg %p1461_p8 }
  0x25   : > { %p1469_p10 = pnand %p1468_p5, %p1462_p11 }
  0x27   : > { %1472 = shalt.err (!%p1469_p10)
}
  0x28   : > { %s1542_s13 = smov 64   ;;  %s1543_s14 = smov 4  }
  0x29   : > { %1367 = dma.hbm_to_vmem [thread:$0]  (!%p1631_p12), %s1933_s2, 3072, %s154_s29, [#allocation3], %s1542_s13, %s1542_s13, %s1543_s14  }
  0x2a   : > { %p1942_p13 = scmp.ne.s32.totalorder %s1940_s27, 0 }
  0x2b   : > { %p1943_p1 = scmp.eq.s32.totalorder (!%p1942_p13), %s1595_s19, 0 }
  0x2c   : > { %189 = sbr.rel (%p1942_p13) target bundleno = 1016 (0x3f8), region = 36 }
  0x33   : > { %1518 = dma.done.wait (%p1943_p1), [#allocation3], 3072   ;;  %p1944_p0 = pmov %p1943_p1 }
  0x34   : > { %s1658_s23 = smul.u32 14, %s1595_s19  ;;  %v1544_v0 = vmov 0.0   ;;  %vm1545_vm0 = vmmov 0   ;;  %vm316_vm1 = vcmask 1041408   ;;  %v253_v1 = vld [vmem:[%s1932_s1] sm:$0x3] }
  0x35   : > { %1520 = vsyncadd (%p1944_p0), [#allocation3], 4294964224  ;;  %1180 = vmatprep.subr.bf16.mxu0 %v1544_v0  ;;  %1182 = vmatprep.mubr.msk.bf16.mxu0 %vm1545_vm0, %v1544_v0  ;;  %v318_v2 = vsel %vm316_vm1, %v253_v1, 0  ;;  %vm294_vm2 = vcmask 31744   ;;  %v1421_v4 = vld [vmem:[#allocation2] sm:$0xff]   ;;  %v1422_v6 = vld [vmem:[#allocation2 + $0x8] sm:$0xff]  }
  0x36   : > { %p224_p5 = scmp.lt.s32.totalorder %s1658_s23, 24  ;;  %1210 = vmatprep.subr.bf16.mxu1 %v1544_v0  ;;  %1226 = vmatprep.mubr.msk.bf16.mxu1 %vm1545_vm0, %v1544_v0  ;;  %v1423_v7 = vld [vmem:[#allocation2 + $0x10] sm:$0xff]   ;;  %v1424_v9 = vld [vmem:[#allocation2 + $0x18] sm:$0xff]   ;;  %v1425_v10 = vld [vmem:[#allocation2 + $0x20] sm:$0xff]   ;;  %s216_s14 = sand.u32 1, %s1531_s16  }
  0x37   : > { %1181 = vmatpush3.bf16.msra.mxu0 %v318_v2  ;;  %1211 = vmatpush3.bf16.msra.mxu1 %v1421_v4  ;;  %v1426_v12 = vld [vmem:[#allocation2 + $0x28] sm:$0xff]   ;;  %v1427_v16 = vld [vmem:[#allocation2 + $0x30] sm:$0xff]   ;;  %v1428_v17 = vld [vmem:[#allocation2 + $0x38] sm:$0xff]   ;;  %s1358_s20 = smul.u32 112, %s216_s14  ;;  %s1870_s29 = scalar_lea.sflag [#allocation4], %s216_s14 }
  0x38   : > { %s225_s27 = scalar_select %p224_p5, %s1658_s23, 24  ;;  %1254 = vmatprep.subr.bf16.mxu0 %v1544_v0  ;;  %1212 = vmatprep.subr.bf16.mxu1 %v1544_v0  ;;  %v1429_v18 = vld [vmem:[#allocation2 + $0x40] sm:$0xff]   ;;  %v1430_v19 = vld [vmem:[#allocation2 + $0x48] sm:$0xff]   ;;  %v1431_v20 = vld [vmem:[#allocation2 + $0x50] sm:$0xff]  }
  0x39   : > { %v1432_v21 = vld [vmem:[#allocation2 + $0x58] sm:$0xff]   ;;  %v1433_v22 = vld [vmem:[#allocation2 + $0x60] sm:$0xff]   ;;  %v1434_v23 = vld [vmem:[#allocation2 + $0x68] sm:$0xff]   ;;  %p1945_p6 = scmp.ne.s32.totalorder %s1938_s25, 0 }
  0x3a   : > { %s1076_s28 = sshll.u32 %s225_s27, 2  ;;  %v1435_v24 = vld [vmem:[#allocation2 + $0x70] sm:$0xff]   ;;  %s985_s30 = ssub.s32 (%p1945_p6), 25, %s1658_s23 }
  0x3b   : > { %s1674_s7 = scalar_lea.vmem %s1931_s0, %s1076_s28  ;;  %1213 = vmatpush3.bf16.msra.mxu1 %v1422_v6  ;;  %v1723_v25 = vld [vmem:[%s1934_s3] ss:$0 sm:$0xff]  ;;  %s1840_s28 = scalar_lea.vmem [#allocation5], %s1358_s20 }
  0x3c   : > { %v1414_v3 = vld [vmem:[%s1674_s7] sm:$0xff]   ;;  %v1415_v5 = vld [vmem:[%s1674_s7 + $0x8] sm:$0xff]   ;;  %v1416_v8 = vld [vmem:[%s1674_s7 + $0x10] sm:$0xff]   ;;  %1214 = vmatprep.subr.bf16.mxu1 %v1544_v0  ;;  %p986_p9 = scmp.lt.s32.totalorder (%p1945_p6), %s985_s30, 14 }
  0x3d   : > { %1183 = vmatmul.mubr.msk.bf16.vlgmr.msra.gmra.mrb[0].mxu0 %vm294_vm2, %v1414_v3  ;;  %v1417_v11 = vld [vmem:[%s1674_s7 + $0x18] sm:$0xff]   ;;  %v1418_v13 = vld [vmem:[%s1674_s7 + $0x20] sm:$0xff]   ;;  %v1419_v14 = vld [vmem:[%s1674_s7 + $0x28] sm:$0xff]  }
  0x3e   : > { %1186 = vmatprep.mubr.msk.bf16.mxu0 %vm1545_vm0, %v1544_v0  ;;  %v1420_v15 = vld [vmem:[%s1674_s7 + $0x30] sm:$0xff]   ;;  %1255 = vmatpush3.bf16.msra.mxu0 %v1429_v18 }
  0x3f   : > { %1215 = vmatpush3.bf16.msra.mxu1 %v1423_v7  ;;  %1256 = vmatprep.subr.bf16.mxu0 %v1544_v0 }
  0x40   : > { %1216 = vmatprep.subr.bf16.mxu1 %v1544_v0 }
  0x42   : > { %1257 = vmatpush3.bf16.msra.mxu0 %v1430_v19 }
  0x43   : > { %1217 = vmatpush3.bf16.msra.mxu1 %v1424_v9  ;;  %1258 = vmatprep.subr.bf16.mxu0 %v1544_v0 }
  0x44   : > { %1218 = vmatprep.subr.bf16.mxu1 %v1544_v0 }
  0x45   : > { %1187 = vmatmul.mubr.msk.bf16.gmra.mrb[4].mxu0 %vm294_vm2, %v1415_v5 }
  0x46   : > { %1190 = vmatprep.mubr.msk.bf16.mxu0 %vm1545_vm0, %v1544_v0  ;;  %1259 = vmatpush3.bf16.msra.mxu0 %v1431_v20 }
  0x47   : > { %1219 = vmatpush3.bf16.msra.mxu1 %v1425_v10  ;;  %1260 = vmatprep.subr.bf16.mxu0 %v1544_v0 }
  0x48   : > { %1220 = vmatprep.subr.bf16.mxu1 %v1544_v0 }
  0x4a   : > { %1261 = vmatpush3.bf16.msra.mxu0 %v1432_v21 }
  0x4b   : > { %1221 = vmatpush3.bf16.msra.mxu1 %v1426_v12  ;;  %1262 = vmatprep.subr.bf16.mxu0 %v1544_v0 }
  0x4c   : > { %1222 = vmatprep.subr.bf16.mxu1 %v1544_v0 }
  0x4d   : > { %1191 = vmatmul.mubr.msk.bf16.gmra.mrb[8].mxu0 %vm294_vm2, %v1416_v8 }
  0x4e   : > { %1194 = vmatprep.mubr.msk.bf16.mxu0 %vm1545_vm0, %v1544_v0  ;;  %1263 = vmatpush3.bf16.msra.mxu0 %v1433_v22 }
  0x4f   : > { %1223 = vmatpush3.bf16.msra.mxu1 %v1427_v16  ;;  %1264 = vmatprep.subr.bf16.mxu0 %v1544_v0 }
  0x50   : > { %1224 = vmatprep.subr.bf16.mxu1 %v1544_v0 }
  0x52   : > { %1265 = vmatpush3.bf16.msra.mxu0 %v1434_v23 }
  0x53   : > { %1225 = vmatpush3.bf16.msra.mxu1 %v1428_v17  ;;  %1266 = vmatprep.subr.bf16.mxu0 %v1544_v0 }
  0x54   : > { %1342 = vmatprep.subr.bf16.mxu1 %v1544_v0 }
  0x55   : > { %1195 = vmatmul.mubr.msk.bf16.gmra.mrb[12].mxu0 %vm294_vm2, %v1417_v11 }
  0x56   : > { %1198 = vmatprep.mubr.msk.bf16.mxu0 %vm1545_vm0, %v1544_v0  ;;  %1267 = vmatpush3.bf16.msra.mxu0 %v1435_v24 }
  0x57   : > { %1268 = vmatprep.subr.bf16.mxu0 %v1544_v0 }
  0x5d   : > { %1199 = vmatmul.mubr.msk.bf16.gmra.mrb[16].mxu0 %vm294_vm2, %v1418_v13 }
  0x5e   : > { %1202 = vmatprep.mubr.msk.bf16.mxu0 %vm1545_vm0, %v1544_v0 }
  0x65   : > { %1203 = vmatmul.mubr.msk.bf16.gmra.mrb[20].mxu0 %vm294_vm2, %v1419_v14 }
  0x66   : > { %1206 = vmatprep.mubr.msk.bf16.mxu0 %vm1545_vm0, %v1544_v0 }
  0x6d   : > { %1207 = vmatmul.mubr.msk.bf16.gmra.mrb[24].mxu0 %vm294_vm2, %v1420_v15 }
  0x6e   : > { %1270 = vmatprep.mubr.msk.bf16.mxu0 %vm1545_vm0, %v1544_v0 }
 0x110   : > { %v354_v26 = vpop.f32.mrb[0].mxu0 }
 0x111   : > { %v355_v27 = vadd.f32 %v1723_v25, %v354_v26  ;;  %v1184_v28 = vpop.f32.mrb[1].mxu0 }
 0x112   : > { %v357_v29 = vpop.f32.mrb[2].mxu0  ;;  %v1437_v28 = vld [vmem:[#allocation2 + $0x80] sm:$0xff]  }
 0x113   : > { %v358_v30 = vadd.f32 %v1723_v25, %v357_v29  ;;  %v1185_v31 = vpop.f32.mrb[3].mxu0  ;;  %v409_v32 = vmax.f32 %v355_v27, 0.0  ;;  %v1436_v27 = vld [vmem:[#allocation2 + $0x78] sm:$0xff]   ;;  %v1438_v29 = vld [vmem:[#allocation2 + $0x88] sm:$0xff]  }
 0x114   : > { %1269 = vmatpush3.bf16.msra.mxu0 %v1436_v27  ;;  %v1441_v31 = vld [vmem:[#allocation2 + $0xa0] sm:$0xff]  }
 0x115   : > { %v410_v33 = vmax.f32 %v358_v30, 0.0  ;;  %1298 = vmatprep.subr.bf16.mxu0 %v1544_v0  ;;  %v1440_v30 = vld [vmem:[#allocation2 + $0x98] sm:$0xff]  }
 0x117   : > { %v423_v34 = vpack.c.bf16 %v410_v33, %v409_v32  ;;  %v1442_v32 = vld [vmem:[#allocation2 + $0xa8] sm:$0xff]   ;;  %v1763_v33 = vld [vmem:[%s1934_s3 + $0x1] ss:$0 sm:$0xff] }
 0x118   : > { %v362_v35 = vpop.f32.mrb[4].mxu0 }
 0x119   : > { %v363_v36 = vadd.f32 %v1723_v25, %v362_v35  ;;  %v1188_v37 = vpop.f32.mrb[5].mxu0  ;;  %1227 = vmatmul.mubr.bf16.vlgmr.msra.gmra.mrb[0].mxu1 %v423_v34 }
 0x11a   : > { %v365_v38 = vpop.f32.mrb[6].mxu0  ;;  %1230 = vmatprep.mubr.msk.bf16.mxu1 %vm1545_vm0, %v1544_v0  ;;  %1350 = vmatpush3.bf16.msra.mxu1 %v1437_v28 }
 0x11b   : > { %v366_v39 = vadd.f32 %v1723_v25, %v365_v38  ;;  %v1189_v40 = vpop.f32.mrb[7].mxu0  ;;  %v411_v41 = vmax.f32 %v363_v36, 0.0  ;;  %1343 = vmatprep.subr.bf16.mxu1 %v1544_v0 }
 0x11d   : > { %v412_v42 = vmax.f32 %v366_v39, 0.0 }
 0x11e   : > { %1351 = vmatpush3.bf16.msra.mxu1 %v1438_v29 }
 0x11f   : > { %v424_v43 = vpack.c.bf16 %v412_v42, %v411_v41  ;;  %1344 = vmatprep.subr.bf16.mxu1 %v1544_v0 }
 0x120   : > { %v370_v44 = vpop.f32.mrb[8].mxu0 }
 0x121   : > { %v371_v45 = vadd.f32 %v1723_v25, %v370_v44  ;;  %v1192_v46 = vpop.f32.mrb[9].mxu0  ;;  %1231 = vmatmul.mubr.bf16.gmra.mrb[4].mxu1 %v424_v43 }
 0x122   : > { %v373_v47 = vpop.f32.mrb[10].mxu0  ;;  %1234 = vmatprep.mubr.msk.bf16.mxu1 %vm1545_vm0, %v1544_v0 }
 0x123   : > { %v374_v48 = vadd.f32 %v1723_v25, %v373_v47  ;;  %v1193_v49 = vpop.f32.mrb[11].mxu0  ;;  %v413_v50 = vmax.f32 %v371_v45, 0.0 }
 0x125   : > { %v414_v51 = vmax.f32 %v374_v48, 0.0 }
 0x127   : > { %v425_v52 = vpack.c.bf16 %v414_v51, %v413_v50 }
 0x128   : > { %v378_v53 = vpop.f32.mrb[12].mxu0 }
 0x129   : > { %v379_v54 = vadd.f32 %v1723_v25, %v378_v53  ;;  %v1196_v55 = vpop.f32.mrb[13].mxu0  ;;  %1235 = vmatmul.mubr.bf16.gmra.mrb[8].mxu1 %v425_v52 }
 0x12a   : > { %v381_v56 = vpop.f32.mrb[14].mxu0  ;;  %1238 = vmatprep.mubr.msk.bf16.mxu1 %vm1545_vm0, %v1544_v0 }
 0x12b   : > { %v382_v57 = vadd.f32 %v1723_v25, %v381_v56  ;;  %v1197_v58 = vpop.f32.mrb[15].mxu0  ;;  %v415_v59 = vmax.f32 %v379_v54, 0.0 }
 0x12d   : > { %v416_v60 = vmax.f32 %v382_v57, 0.0 }
 0x12f   : > { %v426_v61 = vpack.c.bf16 %v416_v60, %v415_v59 }
 0x130   : > { %v386_v62 = vpop.f32.mrb[16].mxu0 }
 0x131   : > { %v387_v63 = vadd.f32 %v1723_v25, %v386_v62  ;;  %v1200_v1 = vpop.f32.mrb[17].mxu0  ;;  %1239 = vmatmul.mubr.bf16.gmra.mrb[12].mxu1 %v426_v61 }
 0x132   : > { %v389_v2 = vpop.f32.mrb[18].mxu0  ;;  %1242 = vmatprep.mubr.msk.bf16.mxu1 %vm1545_vm0, %v1544_v0 }
 0x133   : > { %v390_v3 = vadd.f32 %v1723_v25, %v389_v2  ;;  %v1201_v4 = vpop.f32.mrb[19].mxu0  ;;  %v417_v5 = vmax.f32 %v387_v63, 0.0 }
 0x135   : > { %v418_v6 = vmax.f32 %v390_v3, 0.0 }
 0x137   : > { %v427_v7 = vpack.c.bf16 %v418_v6, %v417_v5 }
 0x138   : > { %v394_v8 = vpop.f32.mrb[20].mxu0 }
 0x139   : > { %v395_v9 = vadd.f32 %v1723_v25, %v394_v8  ;;  %v1204_v10 = vpop.f32.mrb[21].mxu0  ;;  %1243 = vmatmul.mubr.bf16.gmra.mrb[16].mxu1 %v427_v7 }
 0x13a   : > { %v397_v11 = vpop.f32.mrb[22].mxu0  ;;  %1246 = vmatprep.mubr.msk.bf16.mxu1 %vm1545_vm0, %v1544_v0 }
 0x13b   : > { %v398_v12 = vadd.f32 %v1723_v25, %v397_v11  ;;  %v1205_v13 = vpop.f32.mrb[23].mxu0  ;;  %v419_v14 = vmax.f32 %v395_v9, 0.0 }
 0x13d   : > { %v420_v15 = vmax.f32 %v398_v12, 0.0 }
 0x13f   : > { %v428_v16 = vpack.c.bf16 %v420_v15, %v419_v14 }
 0x140   : > { %v402_v17 = vpop.f32.mrb[24].mxu0 }
 0x141   : > { %v403_v18 = vadd.f32 %v1723_v25, %v402_v17  ;;  %v1208_v19 = vpop.f32.mrb[25].mxu0  ;;  %1247 = vmatmul.mubr.bf16.gmra.mrb[20].mxu1 %v428_v16 }
 0x142   : > { %v405_v20 = vpop.f32.mrb[26].mxu0  ;;  %1250 = vmatprep.mubr.msk.bf16.mxu1 %vm1545_vm0, %v1544_v0 }
 0x143   : > { %v406_v21 = vadd.f32 %v1723_v25, %v405_v20  ;;  %v1209_v22 = vpop.f32.mrb[27].mxu0  ;;  %v421_v23 = vmax.f32 %v403_v18, 0.0  ;;  %v1439_v25 = vld [vmem:[#allocation2 + $0x90] sm:$0xff]  }
 0x144   : > { %1352 = vmatpush3.bf16.msra.mxu1 %v1439_v25 }
 0x145   : > { %v422_v24 = vmax.f32 %v406_v21, 0.0  ;;  %1345 = vmatprep.subr.bf16.mxu1 %v1544_v0 }
 0x147   : > { %v429_v26 = vpack.c.bf16 %v422_v24, %v421_v23 }
 0x148   : > { %1353 = vmatpush3.bf16.msra.mxu1 %v1440_v30 }
 0x149   : > { %1251 = vmatmul.mubr.bf16.gmra.mrb[24].mxu1 %v429_v26  ;;  %1346 = vmatprep.subr.bf16.mxu1 %v1544_v0 }
 0x14a   : > { %1318 = vmatprep.mubr.msk.bf16.mxu1 %vm1545_vm0, %v1544_v0 }
 0x14c   : > { %1354 = vmatpush3.bf16.msra.mxu1 %v1441_v31 }
 0x14d   : > { %1347 = vmatprep.subr.bf16.mxu1 %v1544_v0 }
 0x150   : > { %1355 = vmatpush3.bf16.msra.mxu1 %v1442_v32 }
 0x151   : > { %1348 = vmatprep.subr.bf16.mxu1 %v1544_v0 }
 0x1ec   : > { %v533_v34 = vpop.f32.mrb[0].mxu1 }
 0x1ed   : > { %v534_v35 = vadd.f32 %v1763_v33, %v533_v34  ;;  %v1228_v36 = vpop.f32.mrb[1].mxu1 }
 0x1ee   : > { %v536_v37 = vpop.f32.mrb[2].mxu1  ;;  %v1444_v36 = vld [vmem:[#allocation2 + $0xb8] sm:$0xff]  }
 0x1ef   : > { %v537_v38 = vadd.f32 %v1763_v33, %v536_v37  ;;  %v1229_v39 = vpop.f32.mrb[3].mxu1  ;;  %v588_v40 = vmax.f32 %v534_v35, 0.0  ;;  %v1443_v35 = vld [vmem:[#allocation2 + $0xb0] sm:$0xff]  }
 0x1f0   : > { %1356 = vmatpush3.bf16.msra.mxu1 %v1443_v35 }
 0x1f1   : > { %v589_v41 = vmax.f32 %v537_v38, 0.0  ;;  %1349 = vmatprep.subr.bf16.mxu1 %v1544_v0 }
 0x1f3   : > { %v602_v42 = vpack.c.bf16 %v589_v41, %v588_v40 }
 0x1f4   : > { %v541_v43 = vpop.f32.mrb[4].mxu1  ;;  %1357 = vmatpush3.bf16.msra.mxu1 %v1444_v36 }
 0x1f5   : > { %v542_v44 = vadd.f32 %v1763_v33, %v541_v43  ;;  %v1232_v45 = vpop.f32.mrb[5].mxu1  ;;  %1271 = vmatmul.mubr.bf16.vlgmr.msra.gmra.mrb[28].mxu0 %v602_v42 }
 0x1f6   : > { %v544_v46 = vpop.f32.mrb[6].mxu1  ;;  %1274 = vmatprep.mubr.msk.bf16.mxu0 %vm1545_vm0, %v1544_v0  ;;  %1299 = vmatpush3.bf16.msra.mxu0 %v1437_v28 }
 0x1f7   : > { %v545_v47 = vadd.f32 %v1763_v33, %v544_v46  ;;  %v1233_v48 = vpop.f32.mrb[7].mxu1  ;;  %1300 = vmatprep.subr.bf16.mxu0 %v1544_v0  ;;  %v590_v49 = vmax.f32 %v542_v44, 0.0 }
 0x1f9   : > { %v591_v50 = vmax.f32 %v545_v47, 0.0 }
 0x1fa   : > { %1301 = vmatpush3.bf16.msra.mxu0 %v1438_v29 }
 0x1fb   : > { %v603_v51 = vpack.c.bf16 %v591_v50, %v590_v49  ;;  %1302 = vmatprep.subr.bf16.mxu0 %v1544_v0 }
 0x1fc   : > { %v549_v52 = vpop.f32.mrb[8].mxu1 }
 0x1fd   : > { %v550_v53 = vadd.f32 %v1763_v33, %v549_v52  ;;  %v1236_v54 = vpop.f32.mrb[9].mxu1  ;;  %1275 = vmatmul.mubr.bf16.gmra.mrb[32].mxu0 %v603_v51 }
 0x1fe   : > { %v552_v55 = vpop.f32.mrb[10].mxu1  ;;  %1278 = vmatprep.mubr.msk.bf16.mxu0 %vm1545_vm0, %v1544_v0  ;;  %1303 = vmatpush3.bf16.msra.mxu0 %v1439_v25 }
 0x1ff   : > { %v553_v56 = vadd.f32 %v1763_v33, %v552_v55  ;;  %v1237_v57 = vpop.f32.mrb[11].mxu1  ;;  %1304 = vmatprep.subr.bf16.mxu0 %v1544_v0  ;;  %v592_v58 = vmax.f32 %v550_v53, 0.0 }
 0x201   : > { %v593_v59 = vmax.f32 %v553_v56, 0.0 }
 0x202   : > { %1305 = vmatpush3.bf16.msra.mxu0 %v1440_v30 }
 0x203   : > { %v604_v60 = vpack.c.bf16 %v593_v59, %v592_v58  ;;  %1306 = vmatprep.subr.bf16.mxu0 %v1544_v0 }
 0x204   : > { %v557_v61 = vpop.f32.mrb[12].mxu1 }
 0x205   : > { %v558_v62 = vadd.f32 %v1763_v33, %v557_v61  ;;  %v1240_v63 = vpop.f32.mrb[13].mxu1  ;;  %1279 = vmatmul.mubr.bf16.gmra.mrb[36].mxu0 %v604_v60 }
 0x206   : > { %v560_v1 = vpop.f32.mrb[14].mxu1  ;;  %1282 = vmatprep.mubr.msk.bf16.mxu0 %vm1545_vm0, %v1544_v0  ;;  %1307 = vmatpush3.bf16.msra.mxu0 %v1441_v31 }
 0x207   : > { %v561_v2 = vadd.f32 %v1763_v33, %v560_v1  ;;  %v1241_v3 = vpop.f32.mrb[15].mxu1  ;;  %1308 = vmatprep.subr.bf16.mxu0 %v1544_v0  ;;  %v594_v4 = vmax.f32 %v558_v62, 0.0 }
 0x209   : > { %v595_v5 = vmax.f32 %v561_v2, 0.0 }
 0x20a   : > { %1309 = vmatpush3.bf16.msra.mxu0 %v1442_v32 }
 0x20b   : > { %v605_v6 = vpack.c.bf16 %v595_v5, %v594_v4  ;;  %1310 = vmatprep.subr.bf16.mxu0 %v1544_v0 }
 0x20c   : > { %v565_v7 = vpop.f32.mrb[16].mxu1 }
 0x20d   : > { %v566_v8 = vadd.f32 %v1763_v33, %v565_v7  ;;  %v1244_v9 = vpop.f32.mrb[17].mxu1  ;;  %1283 = vmatmul.mubr.bf16.gmra.mrb[40].mxu0 %v605_v6 }
 0x20e   : > { %v568_v10 = vpop.f32.mrb[18].mxu1  ;;  %1286 = vmatprep.mubr.msk.bf16.mxu0 %vm1545_vm0, %v1544_v0  ;;  %1311 = vmatpush3.bf16.msra.mxu0 %v1443_v35 }
 0x20f   : > { %v569_v11 = vadd.f32 %v1763_v33, %v568_v10  ;;  %v1245_v12 = vpop.f32.mrb[19].mxu1  ;;  %v596_v13 = vmax.f32 %v566_v8, 0.0  ;;  %1312 = vmatprep.subr.bf16.mxu0 %v1544_v0 }
 0x211   : > { %v597_v14 = vmax.f32 %v569_v11, 0.0 }
 0x212   : > { %1313 = vmatpush3.bf16.msra.mxu0 %v1444_v36 }
 0x213   : > { %v606_v15 = vpack.c.bf16 %v597_v14, %v596_v13 }
 0x214   : > { %v573_v16 = vpop.f32.mrb[20].mxu1 }
 0x215   : > { %v574_v17 = vadd.f32 %v1763_v33, %v573_v16  ;;  %v1248_v18 = vpop.f32.mrb[21].mxu1  ;;  %1287 = vmatmul.mubr.bf16.gmra.mrb[44].mxu0 %v606_v15 }
 0x216   : > { %v576_v19 = vpop.f32.mrb[22].mxu1  ;;  %1290 = vmatprep.mubr.msk.bf16.mxu0 %vm1545_vm0, %v1544_v0 }
 0x217   : > { %v577_v20 = vadd.f32 %v1763_v33, %v576_v19  ;;  %v1249_v21 = vpop.f32.mrb[23].mxu1  ;;  %v598_v22 = vmax.f32 %v574_v17, 0.0 }
 0x219   : > { %v599_v23 = vmax.f32 %v577_v20, 0.0 }
 0x21b   : > { %v607_v24 = vpack.c.bf16 %v599_v23, %v598_v22 }
 0x21c   : > { %v581_v26 = vpop.f32.mrb[24].mxu1 }
 0x21d   : > { %v582_v27 = vadd.f32 %v1763_v33, %v581_v26  ;;  %v1252_v28 = vpop.f32.mrb[25].mxu1  ;;  %1291 = vmatmul.mubr.bf16.gmra.mrb[48].mxu0 %v607_v24 }
 0x21e   : > { %v584_v29 = vpop.f32.mrb[26].mxu1  ;;  %1294 = vmatprep.mubr.msk.bf16.mxu0 %vm1545_vm0, %v1544_v0 }
 0x21f   : > { %v585_v25 = vadd.f32 %v1763_v33, %v584_v29  ;;  %v1253_v30 = vpop.f32.mrb[27].mxu1  ;;  %v600_v31 = vmax.f32 %v582_v27, 0.0  ;;  %v1804_v33 = vld [vmem:[%s1934_s3 + $0x2] ss:$0 sm:$0xff] }
 0x221   : > { %v601_v32 = vmax.f32 %v585_v25, 0.0 }
 0x223   : > { %v608_v34 = vpack.c.bf16 %v601_v32, %v600_v31 }
 0x225   : > { %1295 = vmatmul.mubr.bf16.gmra.mrb[52].mxu0 %v608_v34 }
 0x226   : > { %1314 = vmatprep.mubr.msk.bf16.mxu0 %vm1545_vm0, %v1544_v0 }
 0x2c8   : > { %v713_v37 = vpop.f32.mrb[28].mxu0 }
 0x2c9   : > { %v714_v38 = vadd.f32 %v1804_v33, %v713_v37  ;;  %v1272_v39 = vpop.f32.mrb[29].mxu0 }
 0x2ca   : > { %v716_v40 = vpop.f32.mrb[30].mxu0 }
 0x2cb   : > { %v717_v41 = vadd.f32 %v1804_v33, %v716_v40  ;;  %v1273_v42 = vpop.f32.mrb[31].mxu0  ;;  %v768_v43 = vmax.f32 %v714_v38, 0.0  ;;  %v1836_v38 = vld [vmem:[%s1934_s3 + $0x3] ss:$0 sm:$0xff] }
 0x2cd   : > { %v769_v44 = vmax.f32 %v717_v41, 0.0 }
 0x2cf   : > { %v782_v45 = vpack.c.bf16 %v769_v44, %v768_v43 }
 0x2d0   : > { %v721_v46 = vpop.f32.mrb[32].mxu0 }
 0x2d1   : > { %v722_v47 = vadd.f32 %v1804_v33, %v721_v46  ;;  %v1276_v48 = vpop.f32.mrb[33].mxu0  ;;  %1315 = vmatmul.mubr.bf16.vlgmr.msra.gmra.mrb[56].mxu0 %v782_v45 }
 0x2d2   : > { %v724_v49 = vpop.f32.mrb[34].mxu0 }
 0x2d3   : > { %v725_v50 = vadd.f32 %v1804_v33, %v724_v49  ;;  %v1277_v51 = vpop.f32.mrb[35].mxu0  ;;  %v770_v52 = vmax.f32 %v722_v47, 0.0 }
 0x2d5   : > { %v771_v53 = vmax.f32 %v725_v50, 0.0 }
 0x2d7   : > { %v783_v54 = vpack.c.bf16 %v771_v53, %v770_v52 }
 0x2d8   : > { %v729_v55 = vpop.f32.mrb[36].mxu0 }
 0x2d9   : > { %v730_v56 = vadd.f32 %v1804_v33, %v729_v55  ;;  %v1280_v57 = vpop.f32.mrb[37].mxu0  ;;  %1319 = vmatmul.mubr.bf16.vlgmr.msra.gmra.mrb[28].mxu1 %v783_v54 }
 0x2da   : > { %v732_v58 = vpop.f32.mrb[38].mxu0  ;;  %1322 = vmatprep.mubr.msk.bf16.mxu1 %vm1545_vm0, %v1544_v0 }
 0x2db   : > { %v733_v59 = vadd.f32 %v1804_v33, %v732_v58  ;;  %v1281_v60 = vpop.f32.mrb[39].mxu0  ;;  %v772_v61 = vmax.f32 %v730_v56, 0.0 }
 0x2dd   : > { %v773_v62 = vmax.f32 %v733_v59, 0.0 }
 0x2df   : > { %v784_v63 = vpack.c.bf16 %v773_v62, %v772_v61 }
 0x2e0   : > { %v737_v1 = vpop.f32.mrb[40].mxu0 }
 0x2e1   : > { %v738_v2 = vadd.f32 %v1804_v33, %v737_v1  ;;  %v1284_v3 = vpop.f32.mrb[41].mxu0  ;;  %1323 = vmatmul.mubr.bf16.gmra.mrb[32].mxu1 %v784_v63 }
 0x2e2   : > { %v740_v4 = vpop.f32.mrb[42].mxu0  ;;  %1326 = vmatprep.mubr.msk.bf16.mxu1 %vm1545_vm0, %v1544_v0 }
 0x2e3   : > { %v741_v5 = vadd.f32 %v1804_v33, %v740_v4  ;;  %v1285_v6 = vpop.f32.mrb[43].mxu0  ;;  %v774_v7 = vmax.f32 %v738_v2, 0.0 }
 0x2e5   : > { %v775_v8 = vmax.f32 %v741_v5, 0.0 }
 0x2e7   : > { %v785_v9 = vpack.c.bf16 %v775_v8, %v774_v7 }
 0x2e8   : > { %v745_v10 = vpop.f32.mrb[44].mxu0 }
 0x2e9   : > { %v746_v11 = vadd.f32 %v1804_v33, %v745_v10  ;;  %v1288_v12 = vpop.f32.mrb[45].mxu0  ;;  %1327 = vmatmul.mubr.bf16.gmra.mrb[36].mxu1 %v785_v9 }
 0x2ea   : > { %v748_v13 = vpop.f32.mrb[46].mxu0  ;;  %1330 = vmatprep.mubr.msk.bf16.mxu1 %vm1545_vm0, %v1544_v0 }
 0x2eb   : > { %v749_v14 = vadd.f32 %v1804_v33, %v748_v13  ;;  %v1289_v15 = vpop.f32.mrb[47].mxu0  ;;  %v776_v16 = vmax.f32 %v746_v11, 0.0 }
 0x2ed   : > { %v777_v17 = vmax.f32 %v749_v14, 0.0 }
 0x2ef   : > { %v786_v18 = vpack.c.bf16 %v777_v17, %v776_v16 }
 0x2f0   : > { %v753_v19 = vpop.f32.mrb[48].mxu0 }
 0x2f1   : > { %v754_v20 = vadd.f32 %v1804_v33, %v753_v19  ;;  %v1292_v21 = vpop.f32.mrb[49].mxu0  ;;  %1331 = vmatmul.mubr.bf16.gmra.mrb[40].mxu1 %v786_v18 }
 0x2f2   : > { %v756_v22 = vpop.f32.mrb[50].mxu0  ;;  %1334 = vmatprep.mubr.msk.bf16.mxu1 %vm1545_vm0, %v1544_v0 }
 0x2f3   : > { %v757_v23 = vadd.f32 %v1804_v33, %v756_v22  ;;  %v1293_v24 = vpop.f32.mrb[51].mxu0  ;;  %v778_v26 = vmax.f32 %v754_v20, 0.0 }
 0x2f5   : > { %v779_v27 = vmax.f32 %v757_v23, 0.0 }
 0x2f7   : > { %v787_v28 = vpack.c.bf16 %v779_v27, %v778_v26 }
 0x2f8   : > { %v761_v29 = vpop.f32.mrb[52].mxu0 }
 0x2f9   : > { %v762_v25 = vadd.f32 %v1804_v33, %v761_v29  ;;  %v1296_v30 = vpop.f32.mrb[53].mxu0  ;;  %1335 = vmatmul.mubr.bf16.gmra.mrb[44].mxu1 %v787_v28 }
 0x2fa   : > { %v764_v31 = vpop.f32.mrb[54].mxu0  ;;  %1338 = vmatprep.mubr.msk.bf16.mxu1 %vm1545_vm0, %v1544_v0 }
 0x2fb   : > { %v765_v32 = vadd.f32 %v1804_v33, %v764_v31  ;;  %v1297_v34 = vpop.f32.mrb[55].mxu0  ;;  %v780_v35 = vmax.f32 %v762_v25, 0.0 }
 0x2fd   : > { %v781_v36 = vmax.f32 %v765_v32, 0.0 }
 0x2ff   : > { %v788_v37 = vpack.c.bf16 %v781_v36, %v780_v35 }
 0x301   : > { %1339 = vmatmul.mubr.bf16.gmra.mrb[48].mxu1 %v788_v37 }
 0x3a4   : > { %v893_v39 = vpop.f32.mrb[56].mxu0 }
 0x3a5   : > { %v894_v40 = vadd.f32 %v1836_v38, %v893_v39  ;;  %v1316_v41 = vpop.f32.mrb[57].mxu0 }
 0x3a6   : > { %v896_v0 = vpop.f32.mrb[58].mxu0 }
 0x3a7   : > { %v948_v42 = vmax.f32 %v894_v40, 0.0  ;;  %v897_v33 = vadd.f32 %v1836_v38, %v896_v0  ;;  %v1317_v43 = vpop.f32.mrb[59].mxu0 }
 0x3a9   : > { %962 = vst [vmem:[%s1840_s28] sm:$0xff] %v948_v42  ;;  %v949_v44 = vmax.f32 %v897_v33, 0.0 }
 0x3ab   : > { %963 = vst [vmem:[%s1840_s28 + $0x8] sm:$0xff] %v949_v44 }
 0x3ac   : > { %v901_v45 = vpop.f32.mrb[28].mxu1 }
 0x3ad   : > { %v902_v46 = vadd.f32 %v1836_v38, %v901_v45  ;;  %v1320_v47 = vpop.f32.mrb[29].mxu1 }
 0x3ae   : > { %v904_v48 = vpop.f32.mrb[30].mxu1 }
 0x3af   : > { %v950_v49 = vmax.f32 %v902_v46, 0.0  ;;  %v905_v50 = vadd.f32 %v1836_v38, %v904_v48  ;;  %v1321_v51 = vpop.f32.mrb[31].mxu1 }
 0x3b1   : > { %964 = vst [vmem:[%s1840_s28 + $0x10] sm:$0xff] %v950_v49  ;;  %v951_v52 = vmax.f32 %v905_v50, 0.0 }
 0x3b3   : > { %965 = vst [vmem:[%s1840_s28 + $0x18] sm:$0xff] %v951_v52 }
 0x3b4   : > { %v909_v53 = vpop.f32.mrb[32].mxu1 }
 0x3b5   : > { %v910_v54 = vadd.f32 %v1836_v38, %v909_v53  ;;  %v1324_v55 = vpop.f32.mrb[33].mxu1 }
 0x3b6   : > { %v912_v56 = vpop.f32.mrb[34].mxu1 }
 0x3b7   : > { %v952_v57 = vmax.f32 %v910_v54, 0.0  ;;  %v913_v58 = vadd.f32 %v1836_v38, %v912_v56  ;;  %v1325_v59 = vpop.f32.mrb[35].mxu1 }
 0x3b9   : > { %966 = vst [vmem:[%s1840_s28 + $0x20] sm:$0xff] %v952_v57  ;;  %v953_v60 = vmax.f32 %v913_v58, 0.0 }
 0x3bb   : > { %967 = vst [vmem:[%s1840_s28 + $0x28] sm:$0xff] %v953_v60 }
 0x3bc   : > { %v917_v61 = vpop.f32.mrb[36].mxu1 }
 0x3bd   : > { %v918_v62 = vadd.f32 %v1836_v38, %v917_v61  ;;  %v1328_v63 = vpop.f32.mrb[37].mxu1 }
 0x3be   : > { %v920_v1 = vpop.f32.mrb[38].mxu1 }
 0x3bf   : > { %v954_v2 = vmax.f32 %v918_v62, 0.0  ;;  %v921_v3 = vadd.f32 %v1836_v38, %v920_v1  ;;  %v1329_v4 = vpop.f32.mrb[39].mxu1 }
 0x3c1   : > { %968 = vst [vmem:[%s1840_s28 + $0x30] sm:$0xff] %v954_v2  ;;  %v955_v5 = vmax.f32 %v921_v3, 0.0 }
 0x3c3   : > { %969 = vst [vmem:[%s1840_s28 + $0x38] sm:$0xff] %v955_v5 }
 0x3c4   : > { %v925_v6 = vpop.f32.mrb[40].mxu1 }
 0x3c5   : > { %v926_v7 = vadd.f32 %v1836_v38, %v925_v6  ;;  %v1332_v8 = vpop.f32.mrb[41].mxu1 }
 0x3c6   : > { %v928_v9 = vpop.f32.mrb[42].mxu1 }
 0x3c7   : > { %v956_v10 = vmax.f32 %v926_v7, 0.0  ;;  %v929_v11 = vadd.f32 %v1836_v38, %v928_v9  ;;  %v1333_v12 = vpop.f32.mrb[43].mxu1 }
 0x3c9   : > { %970 = vst [vmem:[%s1840_s28 + $0x40] sm:$0xff] %v956_v10  ;;  %v957_v13 = vmax.f32 %v929_v11, 0.0 }
 0x3cb   : > { %971 = vst [vmem:[%s1840_s28 + $0x48] sm:$0xff] %v957_v13 }
 0x3cc   : > { %v933_v14 = vpop.f32.mrb[44].mxu1 }
 0x3cd   : > { %v934_v15 = vadd.f32 %v1836_v38, %v933_v14  ;;  %v1336_v16 = vpop.f32.mrb[45].mxu1 }
 0x3ce   : > { %v936_v17 = vpop.f32.mrb[46].mxu1 }
 0x3cf   : > { %v958_v18 = vmax.f32 %v934_v15, 0.0  ;;  %v937_v19 = vadd.f32 %v1836_v38, %v936_v17  ;;  %v1337_v20 = vpop.f32.mrb[47].mxu1 }
 0x3d1   : > { %972 = vst [vmem:[%s1840_s28 + $0x50] sm:$0xff] %v958_v18  ;;  %v959_v21 = vmax.f32 %v937_v19, 0.0 }
 0x3d3   : > { %973 = vst [vmem:[%s1840_s28 + $0x58] sm:$0xff] %v959_v21 }
 0x3d4   : > { %v941_v22 = vpop.f32.mrb[48].mxu1 }
 0x3d5   : > { %v942_v23 = vadd.f32 %v1836_v38, %v941_v22  ;;  %v1340_v24 = vpop.f32.mrb[49].mxu1  ;;  %983 = sbr.rel (!%p1945_p6) target bundleno = 1016 (0x3f8), region = 44 }
 0x3d6   : > { %v944_v26 = vpop.f32.mrb[50].mxu1 }
 0x3d7   : > { %v960_v27 = vmax.f32 %v942_v23, 0.0  ;;  %v945_v28 = vadd.f32 %v1836_v38, %v944_v26  ;;  %v1341_v29 = vpop.f32.mrb[51].mxu1 }
 0x3d9   : > { %974 = vst [vmem:[%s1840_s28 + $0x60] sm:$0xff] %v960_v27  ;;  %v961_v25 = vmax.f32 %v945_v28, 0.0 }
 0x3db   : > { %975 = vst [vmem:[%s1840_s28 + $0x68] sm:$0xff] %v961_v25 }
 0x3dc   : > { %s1952_s30 = smov (!%p986_p9, %s985_s30), 14 }
 0x3dd   : > { %s1875_s5 = sshll.u32 %s1952_s30, 7 }
 0x3de   : > { %s990_s6 = ssub.s32 1792, %s1875_s5 }
 0x3df   : > { %991 = vsyncadd %s1870_s29, %s990_s6  ;;  %p1120_p10 = scmp.ne.s32.totalorder %s1875_s5, 0  ;;  %s1126_s7 = smul.u32 1792, %s1595_s19 }
 0x3e0   : > { %s996_s8 = sshll.u32 %s1840_s28, 4  ;;  %s1546_s11 = smov [#allocation5]   ;;  %s1887_s8 = int_to_ptr.vmem [resolvable:$true] %s996_s8 }
 0x3e1   : > { %s1885_s10 = scalar_lea.hbm %s1935_s4, %s1126_s7  ;;  %s1473_s23 = scalar_lea.vmem %s1887_s8, %s1875_s5 }
 0x3e2   : > { %p1474_p12 = scmp.ne.s32.totalorder %s1887_s8, %s1473_s23  ;;  %s1477_s12 = sshll.u32 %s1546_s11, 4  ;;  %s1478_s12 = int_to_ptr.vmem [resolvable:$false] %s1477_s12 }
 0x3e3   : > { %s1479_s19 = scalar_lea.vmem %s1478_s12, 3584  ;;  %p1480_p4 = scmp.lt.s32.totalorder %s1887_s8, %s1478_s12 }
 0x3e4   : > { %p1475_p2 = pnand %p1474_p12, %p1120_p10  ;;  %p1481_p7 = scmp.lt.s32.totalorder %s1479_s19, %s1473_s23 }
 0x3e6   : > { %p1476_p3 = pneg %p1475_p2  ;;  %p1482_p8 = por %p1481_p7, %p1480_p4 }
 0x3e8   : > { %p1483_p11 = pnand %p1482_p8, %p1476_p3 }
 0x3ea   : > { %1486 = shalt.err (!%p1483_p11)
}
 0x3eb   : > { %s1487_s13 = scalar_lea.hbm %s1885_s10, %s1875_s5  ;;  %s1491_s22 = scalar_lea.hbm %s1935_s4, 3200 }
 0x3ec   : > { %p1488_p13 = scmp.ne.s32.totalorder %s1885_s10, %s1487_s13  ;;  %p1492_p5 = scmp.lt.u32.totalorder %s1885_s10, %s1935_s4 }
 0x3ed   : > { %p1493_p6 = scmp.lt.u32.totalorder %s1491_s22, %s1487_s13  ;;  %p1495_p12 = scmp.lt.u32.totalorder %s1487_s13, %s1885_s10 }
 0x3ee   : > { %p1489_p1 = pnand %p1488_p13, %p1120_p10 }
 0x3ef   : > { %p1494_p9 = por %p1493_p6, %p1492_p5 }
 0x3f0   : > { %p1490_p0 = pneg %p1489_p1 }
 0x3f1   : > { %p1496_p2 = por %p1495_p12, %p1494_p9 }
 0x3f3   : > { %p1497_p3 = pnand %p1496_p2, %p1490_p0 }
 0x3f5   : > { %1500 = shalt.err (!%p1497_p3)
}
 0x3f6   : > { %s1547_s30 = smov 128   ;;  %s1548_s6 = smov 8  }
 0x3f7   : > { %1002 = dma.vmem_to_hbm [thread:$0]  (%p1120_p10), %s1887_s8, %s1875_s5, %s1885_s10, %s1870_s29, %s1547_s30, %s1547_s30, %s1548_s6  }
 0x3f8 PF: > { %p1374_p4 = scmp.ge.s32.totalorder %s1539_s18, 2  ;;  %s1011_s7 = sand.u32 1, %s1527_s15  }
 0x3f9   : > { %p1946_p7 = scmp.ne.s32.totalorder %s1939_s26, 0  ;;  %s1012_s25 = scalar_lea.sflag [#allocation4], %s1011_s7 }
 0x3fb   : > { %p1369_p8 = pnand %p1374_p4, %p1946_p7 }
 0x3fd   : > { %1522 = dma.done.wait (!%p1369_p8), %s1012_s25, 1792  }
 0x3fe   : > { %1524 = vsyncadd (!%p1369_p8), %s1012_s25, 4294965504  ;;  %p15_p11 = scmp.ge.s32.totalorder %s1599_s21, 4   ;;  %s1947_s15 = smov %s1531_s16 }
 0x3ff   : > { %s1948_s16 = smov %s1535_s17  ;;  %s1949_s17 = smov %s1610_s24 }
 0x400   : > { %s1950_s18 = smov %s1599_s21  ;;  %17 = sbr.rel (!%p15_p11) target bundleno = 4 (0x4), region = 78 }
 0x407   :  { %1017 = vsyncpa [#allocation3], 1 }
 0x408   :  { %1019 = vsyncpa [#allocation3 + $0x1], 1 }
 0x409   :  { %1020 = vsyncpa [#allocation4], 1 }
 0x40a   :  { %1022 = vsyncpa [#allocation4 + $0x1], 1 }

</bundles_post_ra>
